<compile_context>
chip_gen: v7x
topology: tpu7x:2x2x1
jax: 0.10.0
libtpu: 0.0.40
codegen_flags: <defaults>
</compile_context>

<pallas_src>
import functools
import math

import jax
import jax.numpy as jnp
from jax.experimental import pallas as pl
from jax.experimental.pallas import tpu as pltpu

_TM_MAX = 512
_TN_MAX = 512
_TK_MAX = 1024
_VMEM_LIMIT_BYTES = 32 * 1024 * 1024          # safe on v5e / v6e / v7x
_VMEM_WORKING_SET_BUDGET = 24 * 1024 * 1024   # leave headroom under the limit


def _round_up(v, m):
    return ((v + m - 1) // m) * m


def _sublane_multiple(dtype):
    # f32 -> 8, bf16 -> 16, int8/fp8 -> 32 (sub-32-bit dtypes pack sublanes).
    return {4: 8, 2: 16, 1: 32}[jnp.dtype(dtype).itemsize]


def _largest_divisor_tile(full_128, cap):
    """Largest multiple of 128 that is <= cap and divides full_128 (a multiple of 128)."""
    t = min(cap, full_128)
    t = (t // 128) * 128
    while full_128 % t:
        t -= 128
    return t


def _working_set_bytes(tm, tn, tk, k_pad, rank_pad, c_item, o_item=4):
    """Estimate of the double-buffered VMEM working set for the main kernel."""
    return (2 * tm * tk * c_item             # x block
            + 2 * tk * tn * c_item           # W0^T block
            + 2 * tm * tn * o_item           # output block
            + 2 * k_pad * rank_pad * c_item  # A^T (fully resident)
            + 2 * rank_pad * tn * c_item     # B^T * scale block
            + 2 * tn * 4                     # bias block (f32)
            + tm * tn * 4                    # f32 base accumulator
            + tm * rank_pad * 4)             # f32 down-projection accumulator


def prepare_lora_params(w0, b0, a_down, b_up, alpha, rank,
                        compute_dtype=jnp.bfloat16,
                        max_tm=_TM_MAX, max_tn=_TN_MAX, max_tk=_TK_MAX):
    """One-time (init-time) weight prep: transpose, fold scaling, cast, zero-pad.

    w0: [out, in], b0: [out], a_down (lora_down.weight): [rank, in],
    b_up (lora_up.weight): [out, rank].
    """
    out_features, in_features = w0.shape
    scaling = float(alpha) / float(rank)

    k_pad = _round_up(in_features, 128)
    n_pad = _round_up(out_features, 128)
    rank_pad = _round_up(max(rank, 1), 128)   # pad rank to full lane width(s)

    tk = _largest_divisor_tile(k_pad, max_tk)
    tn = _largest_divisor_tile(n_pad, max_tn)

    # Shrink tiles if the double-buffered working set would exceed the budget.
    c_item = jnp.dtype(compute_dtype).itemsize
    while (_working_set_bytes(max_tm, tn, tk, k_pad, rank_pad, c_item)
           > _VMEM_WORKING_SET_BUDGET) and (tk > 128 or tn > 128):
        if tk >= tn and tk > 128:
            tk = _largest_divisor_tile(k_pad, tk - 128)
        elif tn > 128:
            tn = _largest_divisor_tile(n_pad, tn - 128)
        else:
            break

    f32 = jnp.float32
    # Pre-transposed, zero-padded weights in the compute dtype; every in-kernel
    # matmul is a lane-dense [M,K] @ [K,N].
    w0t = jnp.zeros((k_pad, n_pad), compute_dtype).at[:in_features, :out_features].set(
        jnp.asarray(w0, f32).T.astype(compute_dtype))
    bias = jnp.zeros((1, n_pad), f32).at[0, :out_features].set(jnp.asarray(b0, f32))
    at = jnp.zeros((k_pad, rank_pad), compute_dtype).at[:in_features, :rank].set(
        jnp.asarray(a_down, f32).T.astype(compute_dtype))
    # Fold alpha/rank into the up-projection weight (once, in f32, then cast).
    bt = jnp.zeros((rank_pad, n_pad), compute_dtype).at[:rank, :out_features].set(
        (jnp.asarray(b_up, f32) * scaling).T.astype(compute_dtype))

    return dict(w0t=w0t, bias=bias, at=at, bt=bt,
                in_features=in_features, out_features=out_features,
                k_pad=k_pad, n_pad=n_pad, rank_pad=rank_pad,
                tn=tn, tk=tk, max_tm=max_tm,
                compute_dtype=jnp.dtype(compute_dtype))


def _lora_kernel_single_k(x_ref, w0t_ref, bias_ref, at_ref, bt_ref, o_ref,
                          down_ref):
    """Fast path: whole reduction fits in one TK tile. grid = (i, j)."""
    j = pl.program_id(1)
    x = x_ref[...]

    # Down-projection is j-invariant: compute it once per row tile (j == 0)
    # and reuse the f32 scratch for all other j tiles.  Requires the j axis to
    # be "arbitrary" (sequential on one core).
    @pl.when(j == 0)
    def _():
        down_ref[...] = jnp.dot(x, at_ref[...], preferred_element_type=jnp.float32)

    base = jnp.dot(x, w0t_ref[...], preferred_element_type=jnp.float32)
    lora = jnp.dot(down_ref[...].astype(bt_ref.dtype), bt_ref[...],
                   preferred_element_type=jnp.float32)
    o_ref[...] = (base + bias_ref[...] + lora).astype(o_ref.dtype)


def _lora_kernel_multi_k(x_ref, w0t_ref, bias_ref, at_ref, bt_ref, o_ref,
                         acc_ref, down_ref, *, tk):
    """General path with K-axis accumulation. grid = (i, j, k), k innermost."""
    j = pl.program_id(1)
    k = pl.program_id(2)

    @pl.when(k == 0)
    def _():
        acc_ref[...] = jnp.zeros_like(acc_ref)

    @pl.when(jnp.logical_and(j == 0, k == 0))
    def _():
        down_ref[...] = jnp.zeros_like(down_ref)

    x = x_ref[...]
    acc_ref[...] += jnp.dot(x, w0t_ref[...], preferred_element_type=jnp.float32)

    # Down-projection only on the j==0 pass; A^T is fully VMEM-resident, slice
    # the current K chunk out of it.
    @pl.when(j == 0)
    def _():
        koff = pl.multiple_of(k * tk, tk)
        down_ref[...] += jnp.dot(x, at_ref[pl.ds(koff, tk), :],
                                 preferred_element_type=jnp.float32)

    @pl.when(k == pl.num_programs(2) - 1)
    def _():
        lora = jnp.dot(down_ref[...].astype(bt_ref.dtype), bt_ref[...],
                       preferred_element_type=jnp.float32)
        o_ref[...] = (acc_ref[...] + bias_ref[...] + lora).astype(o_ref.dtype)


def lora_linear(x, params):
    """x: [..., in_features]; params from prepare_lora_params()."""
    out_dtype = x.dtype
    compute_dtype = params["compute_dtype"]
    in_features = params["in_features"]
    out_features = params["out_features"]
    k_pad, n_pad = params["k_pad"], params["n_pad"]
    rank_pad = params["rank_pad"]
    tn, tk = params["tn"], params["tk"]

    orig_shape = x.shape
    m = 1
    for d in orig_shape[:-1]:
        m *= d
    x2d = x.reshape(m, in_features).astype(compute_dtype)

    sub = _sublane_multiple(compute_dtype)
    tm = min(params["max_tm"], _round_up(m, sub))
    m_pad = _round_up(m, tm)
    if m_pad != m or k_pad != in_features:
        x2d = jnp.pad(x2d, ((0, m_pad - m), (0, k_pad - in_features)))

    gm, gn, gk = m_pad // tm, n_pad // tn, k_pad // tk

    c_item = jnp.dtype(compute_dtype).itemsize
    o_item = jnp.dtype(out_dtype).itemsize
    flops = (2 * m_pad * k_pad * n_pad           # base matmul
             + 2 * m_pad * k_pad * rank_pad      # LoRA down (once per row tile)
             + 2 * m_pad * rank_pad * n_pad)     # LoRA up (epilogue)
    bytes_accessed = (m_pad * k_pad * c_item * gn       # x streamed per j tile
                      + k_pad * n_pad * c_item * gm     # W0^T streamed per i tile
                      + k_pad * rank_pad * c_item       # A^T resident (one DMA)
                      + rank_pad * n_pad * c_item * gm  # B^T*scale per i tile
                      + n_pad * 4 * gm                  # bias
                      + m_pad * n_pad * o_item)         # output
    cost = pl.CostEstimate(flops=int(flops), transcendentals=0,
                           bytes_accessed=int(bytes_accessed))

    if gk == 1:
        kernel = _lora_kernel_single_k
        grid = (gm, gn)
        in_specs = [
            pl.BlockSpec((tm, tk), lambda i, j: (i, 0)),            # x
            pl.BlockSpec((tk, tn), lambda i, j: (0, j)),            # W0^T
            pl.BlockSpec((1, tn), lambda i, j: (0, j)),             # bias (f32)
            pl.BlockSpec((k_pad, rank_pad), lambda i, j: (0, 0)),   # A^T resident
            pl.BlockSpec((rank_pad, tn), lambda i, j: (0, j)),      # B^T*scale
        ]
        out_spec = pl.BlockSpec((tm, tn), lambda i, j: (i, j))
        scratch = [pltpu.VMEM((tm, rank_pad), jnp.float32)]
        dim_sem = ("parallel", "arbitrary")     # j must be arbitrary (j==0 gate)
    else:
        kernel = functools.partial(_lora_kernel_multi_k, tk=tk)
        grid = (gm, gn, gk)
        in_specs = [
            pl.BlockSpec((tm, tk), lambda i, j, k: (i, k)),            # x
            pl.BlockSpec((tk, tn), lambda i, j, k: (k, j)),            # W0^T
            pl.BlockSpec((1, tn), lambda i, j, k: (0, j)),             # bias (f32)
            pl.BlockSpec((k_pad, rank_pad), lambda i, j, k: (0, 0)),   # A^T resident
            pl.BlockSpec((rank_pad, tn), lambda i, j, k: (0, j)),      # B^T*scale
        ]
        out_spec = pl.BlockSpec((tm, tn), lambda i, j, k: (i, j))
        scratch = [pltpu.VMEM((tm, tn), jnp.float32),
                   pltpu.VMEM((tm, rank_pad), jnp.float32)]
        dim_sem = ("parallel", "arbitrary", "arbitrary")

    out2d = pl.pallas_call(
        kernel,
        out_shape=jax.ShapeDtypeStruct((m_pad, n_pad), out_dtype),
        grid_spec=pltpu.PrefetchScalarGridSpec(
            num_scalar_prefetch=0,
            grid=grid,
            in_specs=in_specs,
            out_specs=out_spec,
            scratch_shapes=scratch,
        ),
        compiler_params=pltpu.CompilerParams(
            dimension_semantics=dim_sem,
            vmem_limit_bytes=_VMEM_LIMIT_BYTES),
        cost_estimate=cost,
    )(x2d, params["w0t"], params["bias"], params["at"], params["bt"])

    out2d = out2d[:m, :out_features]
    return out2d.reshape(*orig_shape[:-1], out_features)


def _reference(x, w0, b0, a_down, b_up, alpha, rank):
    scaling = alpha / rank
    return (x @ w0.T + b0) + ((x @ a_down.T) @ b_up.T) * scaling


if __name__ == "__main__":
    key = jax.random.PRNGKey(0)

    # ---- Test 1: small module-consistent shapes, bf16 MXU, single-K fast path.
    batch, seq, in_features, out_features, rank, alpha = 2, 8, 32, 32, 4, 1
    kx, kw, kb, ka, kbu, key = jax.random.split(key, 6)

    x = jax.random.normal(kx, (batch, seq, in_features), dtype=jnp.float32)
    w0 = jax.random.normal(kw, (out_features, in_features), jnp.float32) * 0.05
    b0 = jax.random.normal(kb, (out_features,), jnp.float32) * 0.05
    bound = 1.0 / math.sqrt(in_features)
    a_down = jax.random.uniform(ka, (rank, in_features), jnp.float32,
                                minval=-bound, maxval=bound)
    # lora_up is zero-initialized in the module; use small random values so the
    # LoRA path is exercised (still deterministic).
    b_up = jax.random.normal(kbu, (out_features, rank), jnp.float32) * 0.02

    params = prepare_lora_params(w0, b0, a_down, b_up, alpha, rank,
                                 compute_dtype=jnp.bfloat16)
    out = lora_linear(x, params)
    jax.block_until_ready(out)

    ref = _reference(x, w0, b0, a_down, b_up, alpha, rank)
    assert out.shape == (batch, seq, out_features)
    assert jnp.allclose(out, ref, atol=2e-2, rtol=2e-2), "bf16 path mismatch"

    # ---- Test 2: multi-K / multi-N grid (exercises the accumulator kernel and
    # the j==0 down-projection reuse), f32 compute for a tight check.
    batch2, seq2, in2, out2, rank2, alpha2 = 2, 8, 256, 256, 4, 2
    kx2, kw2, kb2, ka2, kbu2, key = jax.random.split(key, 6)

    x2 = jax.random.normal(kx2, (batch2, seq2, in2), dtype=jnp.float32)
    w02 = jax.random.normal(kw2, (out2, in2), jnp.float32) * 0.05
    b02 = jax.random.normal(kb2, (out2,), jnp.float32) * 0.05
    bound2 = 1.0 / math.sqrt(in2)
    a_down2 = jax.random.uniform(ka2, (rank2, in2), jnp.float32,
                                 minval=-bound2, maxval=bound2)
    b_up2 = jax.random.normal(kbu2, (out2, rank2), jnp.float32) * 0.02

    params2 = prepare_lora_params(w02, b02, a_down2, b_up2, alpha2, rank2,
                                  compute_dtype=jnp.float32,
                                  max_tk=128, max_tn=128)   # force (1, 2, 2) grid
    out_2 = lora_linear(x2, params2)
    jax.block_until_ready(out_2)

    ref2 = _reference(x2, w02, b02, a_down2, b_up2, alpha2, rank2)
    assert out_2.shape == (batch2, seq2, out2)
    assert jnp.allclose(out_2, ref2, atol=1e-4, rtol=1e-4), "f32 multi-k mismatch"

    print("KERNEL_OK")
</pallas_src>

<mosaic_0001>
module attributes {stable_mosaic.version = 11 : i64} {
  func.func @_lora_kernel_single_k(%arg0: i32, %arg1: i32, %arg2: memref<16x128xbf16, #tpu.memory_space<vmem>>, %arg3: memref<128x128xbf16, #tpu.memory_space<vmem>>, %arg4: memref<1x128xf32, #tpu.memory_space<vmem>>, %arg5: memref<128x128xbf16, #tpu.memory_space<vmem>>, %arg6: memref<128x128xbf16, #tpu.memory_space<vmem>>, %arg7: memref<16x128xf32, #tpu.memory_space<vmem>>, %arg8: memref<16x128xf32, #tpu.memory_space<vmem>>) attributes {dimension_semantics = [#tpu.dimension_semantics<parallel>, #tpu.dimension_semantics<arbitrary>], iteration_bounds = array<i64: 1, 1>, scalar_prefetch = 0 : i64, scratch_operands = 1 : i64, tpu.core_type = #tpu.core_type<tc>, window_params = [{transform_indices = @transform_0, window_bounds = array<i64: 16, 128>}, {transform_indices = @transform_1, window_bounds = array<i64: 128, 128>}, {transform_indices = @transform_2, window_bounds = array<i64: 1, 128>}, {pipeline_mode = #tpu.pipeline_mode<synchronous>, transform_indices = @transform_3, window_bounds = array<i64: 128, 128>}, {transform_indices = @transform_4, window_bounds = array<i64: 128, 128>}, {transform_indices = @transform_5, window_bounds = array<i64: 16, 128>}]} {
    %c0 = arith.constant 0 : index
    %c0_0 = arith.constant 0 : index
    %0 = vector.load %arg2[%c0, %c0_0] : memref<16x128xbf16, #tpu.memory_space<vmem>>, vector<16x128xbf16>
    %c0_i32 = arith.constant 0 : i32
    %1 = arith.cmpi eq, %arg1, %c0_i32 : i32
    %2 = arith.extui %1 : i1 to i32
    %c0_i32_1 = arith.constant 0 : i32
    %3 = arith.cmpi ne, %2, %c0_i32_1 : i32
    scf.if %3 {
      %c0_13 = arith.constant 0 : index
      %c0_14 = arith.constant 0 : index
      %15 = vector.load %arg5[%c0_13, %c0_14] : memref<128x128xbf16, #tpu.memory_space<vmem>>, vector<128x128xbf16>
      %cst_15 = arith.constant dense<0.000000e+00> : vector<16x128xf32>
      %16 = tpu.matmul %0, %15, %cst_15 {dimension_numbers = #tpu.dot_dimension_numbers<[1], [0], [0], [1], [0, 0, 1, 1], [], []>} : vector<16x128xbf16>, vector<128x128xbf16>, vector<16x128xf32> -> vector<16x128xf32>
      %c0_16 = arith.constant 0 : index
      %c0_17 = arith.constant 0 : index
      %17 = vector.load %arg8[%c0_16, %c0_17] : memref<16x128xf32, #tpu.memory_space<vmem>>, vector<16x128xf32>
      tpu.vector_store %arg8[%c0_16, %c0_17], %16 {strides = array<i32>} : memref<16x128xf32, #tpu.memory_space<vmem>>, vector<16x128xf32>,
    } else {
    }
    %c0_2 = arith.constant 0 : index
    %c0_3 = arith.constant 0 : index
    %4 = vector.load %arg3[%c0_2, %c0_3] : memref<128x128xbf16, #tpu.memory_space<vmem>>, vector<128x128xbf16>
    %cst = arith.constant dense<0.000000e+00> : vector<16x128xf32>
    %5 = tpu.matmul %0, %4, %cst {dimension_numbers = #tpu.dot_dimension_numbers<[1], [0], [0], [1], [0, 0, 1, 1], [], []>} : vector<16x128xbf16>, vector<128x128xbf16>, vector<16x128xf32> -> vector<16x128xf32>
    %c0_4 = arith.constant 0 : index
    %c0_5 = arith.constant 0 : index
    %6 = vector.load %arg8[%c0_4, %c0_5] : memref<16x128xf32, #tpu.memory_space<vmem>>, vector<16x128xf32>
    %7 = arith.truncf %6 : vector<16x128xf32> to vector<16x128xbf16>
    %c0_6 = arith.constant 0 : index
    %c0_7 = arith.constant 0 : index
    %8 = vector.load %arg6[%c0_6, %c0_7] : memref<128x128xbf16, #tpu.memory_space<vmem>>, vector<128x128xbf16>
    %cst_8 = arith.constant dense<0.000000e+00> : vector<16x128xf32>
    %9 = tpu.matmul %7, %8, %cst_8 {dimension_numbers = #tpu.dot_dimension_numbers<[1], [0], [0], [1], [0, 0, 1, 1], [], []>} : vector<16x128xbf16>, vector<128x128xbf16>, vector<16x128xf32> -> vector<16x128xf32>
    %c0_9 = arith.constant 0 : index
    %c0_10 = arith.constant 0 : index
    %10 = vector.load %arg4[%c0_9, %c0_10] : memref<1x128xf32, #tpu.memory_space<vmem>>, vector<1x128xf32>
    %11 = vector.broadcast %10 : vector<1x128xf32> to vector<16x128xf32>
    %12 = arith.addf %5, %11 : vector<16x128xf32>
    %13 = arith.addf %12, %9 : vector<16x128xf32>
    %c0_11 = arith.constant 0 : index
    %c0_12 = arith.constant 0 : index
    %14 = vector.load %arg7[%c0_11, %c0_12] : memref<16x128xf32, #tpu.memory_space<vmem>>, vector<16x128xf32>
    tpu.vector_store %arg7[%c0_11, %c0_12], %13 {strides = array<i32>} : memref<16x128xf32, #tpu.memory_space<vmem>>, vector<16x128xf32>,
    return
  }
  func.func @transform_0(%arg0: i32, %arg1: i32) -> (i32, i32) {
    %c0_i32 = arith.constant 0 : i32
    %c0_i32_0 = arith.constant 0 : i32
    return %arg0, %c0_i32 : i32, i32
  }
  func.func @transform_1(%arg0: i32, %arg1: i32) -> (i32, i32) {
    %c0_i32 = arith.constant 0 : i32
    %c0_i32_0 = arith.constant 0 : i32
    return %c0_i32, %arg1 : i32, i32
  }
  func.func @transform_2(%arg0: i32, %arg1: i32) -> (i32, i32) {
    %c0_i32 = arith.constant 0 : i32
    %c0_i32_0 = arith.constant 0 : i32
    return %c0_i32, %arg1 : i32, i32
  }
  func.func @transform_3(%arg0: i32, %arg1: i32) -> (i32, i32) {
    %c0_i32 = arith.constant 0 : i32
    %c0_i32_0 = arith.constant 0 : i32
    %c0_i32_1 = arith.constant 0 : i32
    return %c0_i32, %c0_i32_0 : i32, i32
  }
  func.func @transform_4(%arg0: i32, %arg1: i32) -> (i32, i32) {
    %c0_i32 = arith.constant 0 : i32
    %c0_i32_0 = arith.constant 0 : i32
    return %c0_i32, %arg1 : i32, i32
  }
  func.func @transform_5(%arg0: i32, %arg1: i32) -> (i32, i32) {
    %c0_i32 = arith.constant 0 : i32
    return %arg0, %arg1 : i32, i32
  }
}

</mosaic_0001>

<bundles_post_ra>
// kernel: tpu_custom_call.1
= control target key start
LH: loop header
LB: loop body
LE: loop exit
PB: predicated region body
PF: predicated region fallthrough
CT: control target
= control target key end

     0   :  { %10 = vsyncpa [#allocation4], 0  ;;  %s879_s0 = inlined_call_operand.hbm [shape: bf16[16,128], index: 0, kind: input, shape index: {}]   ;;  %s880_s1 = inlined_call_operand.hbm [shape: bf16[128,128], index: 1, kind: input, shape index: {}]   ;;  %s881_s2 = inlined_call_operand.vmem [shape: f32[1,128], index: 2, kind: input, shape index: {}]   ;;  %s882_s3 = inlined_call_operand.hbm [shape: bf16[128,128], index: 3, kind: input, shape index: {}]   ;;  %s883_s4 = inlined_call_operand.hbm [shape: bf16[128,128], index: 4, kind: input, shape index: {}]   ;;  %s884_s5 = inlined_call_operand.hbm [shape: f32[16,128], index: 5, kind: output, shape index: {}]  }
   0x1   :  { %11 = vsyncpa [#allocation7], 0 }
   0x2   :  { %12 = vsyncpa [#allocation10], 0 }
   0x3   :  { %13 = vsyncpa [#allocation5], 0  ;;  %s719_s18 = smov [#allocation6]   ;;  %s720_s20 = smov [#allocation3]  }
   0x4   :  { %s31_s19 = sshll.u32 %s719_s18, 4  ;;  %s19_s21 = sshll.u32 %s720_s20, 4  ;;  %s32_s19 = int_to_ptr.vmem [resolvable:$true] %s31_s19  ;;  %s760_s21 = int_to_ptr.vmem [resolvable:$true] %s19_s21 }
   0x5   :  { %s601_s24 = scalar_lea.hbm %s880_s1, 1024 }
   0x6   :  { %p602_p0 = scmp.ne.s32.totalorder %s880_s1, %s601_s24  ;;  %p605_p1 = scmp.lt.u32.totalorder %s601_s24, %s880_s1 }
   0x8   :  { %p607_p2 = pnand %p605_p1, %p602_p0 }
   0xa   :  { %610 = shalt.err (!%p607_p2)
}
   0xb   :  { %s611_s29 = scalar_lea.vmem %s32_s19, 1024  ;;  %p616_p4 = scmp.lt.s32.totalorder %s32_s19, %s32_s19 }
   0xc   :  { %p612_p3 = scmp.ne.s32.totalorder %s32_s19, %s611_s29  ;;  %p617_p5 = scmp.lt.s32.totalorder %s611_s29, %s611_s29 }
   0xe   :  { %p618_p6 = por %p617_p5, %p616_p4 }
  0x10   :  { %p619_p7 = pnand %p618_p6, %p612_p3 }
  0x12   :  { %622 = shalt.err (!%p619_p7)
}
  0x13   :  { %s721_s30 = smov 64   ;;  %s722_s6 = smov 4  }
  0x14   :  { %37 = dma.hbm_to_vmem [thread:$0]  %s880_s1, 1024, %s32_s19, [#allocation7], %s721_s30, %s721_s30, %s722_s6  }
  0x15   :  { %s623_s11 = scalar_lea.hbm %s879_s0, 128 }
  0x16   :  { %p624_p8 = scmp.ne.s32.totalorder %s879_s0, %s623_s11  ;;  %p627_p9 = scmp.lt.u32.totalorder %s623_s11, %s879_s0 }
  0x18   :  { %p629_p10 = pnand %p627_p9, %p624_p8 }
  0x1a   :  { %632 = shalt.err (!%p629_p10)
}
  0x1b   :  { %s633_s16 = scalar_lea.vmem %s760_s21, 128  ;;  %p638_p12 = scmp.lt.s32.totalorder %s760_s21, %s760_s21 }
  0x1c   :  { %p634_p11 = scmp.ne.s32.totalorder %s760_s21, %s633_s16  ;;  %p639_p13 = scmp.lt.s32.totalorder %s633_s16, %s633_s16 }
  0x1e   :  { %p640_p0 = por %p639_p13, %p638_p12 }
  0x20   :  { %p641_p1 = pnand %p640_p0, %p634_p11 }
  0x22   :  { %644 = shalt.err (!%p641_p1)
}
  0x23   :  { %25 = dma.hbm_to_vmem [thread:$0]  %s879_s0, 128, %s760_s21, [#allocation4], %s721_s30, %s721_s30, %s722_s6  }
  0x24   :  { %s723_s18 = smov [#allocation8]   ;;  %s724_s20 = smov [#allocation9]  }
  0x25   :  { %s45_s19 = sshll.u32 %s723_s18, 4  ;;  %s57_s22 = sshll.u32 %s724_s20, 4  ;;  %s46_s19 = int_to_ptr.vmem [resolvable:$true] %s45_s19  ;;  %s797_s22 = int_to_ptr.vmem [resolvable:$true] %s57_s22 }
  0x26   :  { %s645_s25 = scalar_lea.hbm %s882_s3, 1024 }
  0x27   :  { %p646_p2 = scmp.ne.s32.totalorder %s882_s3, %s645_s25  ;;  %p649_p3 = scmp.lt.u32.totalorder %s645_s25, %s882_s3 }
  0x29   :  { %p651_p4 = pnand %p649_p3, %p646_p2 }
  0x2b   :  { %654 = shalt.err (!%p651_p4)
}
  0x2c   :  { %s655_s0 = scalar_lea.vmem %s46_s19, 1024  ;;  %p660_p6 = scmp.lt.s32.totalorder %s46_s19, %s46_s19 }
  0x2d   :  { %p656_p5 = scmp.ne.s32.totalorder %s46_s19, %s655_s0  ;;  %p661_p7 = scmp.lt.s32.totalorder %s655_s0, %s655_s0 }
  0x2f   :  { %p662_p8 = por %p661_p7, %p660_p6 }
  0x31   :  { %p663_p9 = pnand %p662_p8, %p656_p5 }
  0x33   :  { %666 = shalt.err (!%p663_p9)
}
  0x34   :  { %51 = dma.hbm_to_vmem [thread:$0]  %s882_s3, 1024, %s46_s19, [#allocation7], %s721_s30, %s721_s30, %s722_s6  }
  0x35   :  { %s667_s10 = scalar_lea.hbm %s883_s4, 1024 }
  0x36   :  { %p668_p10 = scmp.ne.s32.totalorder %s883_s4, %s667_s10  ;;  %p671_p11 = scmp.lt.u32.totalorder %s667_s10, %s883_s4 }
  0x38   :  { %p673_p12 = pnand %p671_p11, %p668_p10 }
  0x3a   :  { %676 = shalt.err (!%p673_p12)
}
  0x3b   :  { %s677_s15 = scalar_lea.vmem %s797_s22, 1024  ;;  %p682_p0 = scmp.lt.s32.totalorder %s797_s22, %s797_s22 }
  0x3c   :  { %p678_p13 = scmp.ne.s32.totalorder %s797_s22, %s677_s15  ;;  %p683_p1 = scmp.lt.s32.totalorder %s677_s15, %s677_s15 }
  0x3e   :  { %p684_p2 = por %p683_p1, %p682_p0 }
  0x40   :  { %p685_p3 = pnand %p684_p2, %p678_p13 }
  0x42   :  { %688 = shalt.err (!%p685_p3)
}
  0x43   :  { %63 = dma.hbm_to_vmem [thread:$0]  %s883_s4, 1024, %s797_s22, [#allocation10], %s721_s30, %s721_s30, %s722_s6  }
  0x44   :  { %711 = dma.done.wait [#allocation4], 128  }
  0x45   :  { %712 = vsyncadd [#allocation4], 4294967168 }
  0x46   :  { %713 = dma.done.wait [#allocation7], 2048  }
  0x47   :  { %714 = vsyncadd [#allocation7], 4294965248 }
  0x48   :  { %715 = dma.done.wait [#allocation10], 1024  }
  0x49   :  { %716 = vsyncadd [#allocation10], 4294966272  ;;  %v725_v0 = vmov 0.0   ;;  %vm726_vm0 = vmmov 0   ;;  %v576_v1 = vld [vmem:[#allocation8] sm:$0xff]   ;;  %v577_v2 = vld [vmem:[#allocation8 + $0x8] sm:$0xff]  }
  0x4a   :  { %499 = vmatprep.subr.bf16.mxu0 %v725_v0  ;;  %515 = vmatprep.mubr.msk.bf16.mxu0 %vm726_vm0, %v725_v0  ;;  %v578_v3 = vld [vmem:[#allocation8 + $0x10] sm:$0xff]   ;;  %v585_v4 = vld [vmem:[#allocation9] sm:$0xff]   ;;  %v579_v5 = vld [vmem:[#allocation8 + $0x18] sm:$0xff]   ;;  %s727_s6 = smov [#allocation11]  }
  0x4b   :  { %519 = vmatprep.subr.bf16.mxu1 %v725_v0  ;;  %535 = vmatprep.mubr.msk.bf16.mxu1 %vm726_vm0, %v725_v0  ;;  %v586_v6 = vld [vmem:[#allocation9 + $0x8] sm:$0xff]   ;;  %v580_v7 = vld [vmem:[#allocation8 + $0x20] sm:$0xff]   ;;  %v587_v8 = vld [vmem:[#allocation9 + $0x10] sm:$0xff]   ;;  %s431_s1 = sshll.u32 %s727_s6, 4  ;;  %s432_s1 = int_to_ptr.vmem [resolvable:$true] %s431_s1 }
  0x4c   :  { %500 = vmatpush3.bf16.msra.mxu0 %v576_v1  ;;  %520 = vmatpush3.bf16.msra.mxu1 %v585_v4  ;;  %v581_v9 = vld [vmem:[#allocation8 + $0x28] sm:$0xff]   ;;  %v588_v10 = vld [vmem:[#allocation9 + $0x18] sm:$0xff]   ;;  %v582_v11 = vld [vmem:[#allocation8 + $0x30] sm:$0xff]   ;;  %s689_s17 = scalar_lea.vmem %s432_s1, 256  ;;  %p694_p5 = scmp.lt.s32.totalorder %s432_s1, %s432_s1 }
  0x4d   :  { %501 = vmatprep.subr.bf16.mxu0 %v725_v0  ;;  %521 = vmatprep.subr.bf16.mxu1 %v725_v0  ;;  %v589_v12 = vld [vmem:[#allocation9 + $0x20] sm:$0xff]   ;;  %v583_v13 = vld [vmem:[#allocation8 + $0x38] sm:$0xff]   ;;  %v590_v14 = vld [vmem:[#allocation9 + $0x28] sm:$0xff]   ;;  %p690_p4 = scmp.ne.s32.totalorder %s432_s1, %s689_s17  ;;  %p695_p6 = scmp.lt.s32.totalorder %s689_s17, %s689_s17 }
  0x4e   :  { %v584_v15 = vld [vmem:[#allocation3] sm:$0xff]   ;;  %v591_v16 = vld [vmem:[#allocation9 + $0x30] sm:$0xff]   ;;  %v593_v21 = vld [vmem:[#allocation6] sm:$0xff]  }
  0x4f   :  { %v592_v17 = vld [vmem:[#allocation9 + $0x38] sm:$0xff]   ;;  %v594_v24 = vld [vmem:[#allocation6 + $0x8] sm:$0xff]   ;;  %v595_v25 = vld [vmem:[#allocation6 + $0x10] sm:$0xff]   ;;  %p696_p7 = por %p695_p6, %p694_p5 }
  0x50   :  { %502 = vmatpush3.bf16.msra.mxu0 %v577_v2  ;;  %522 = vmatpush3.bf16.msra.mxu1 %v586_v6  ;;  %v596_v26 = vld [vmem:[#allocation6 + $0x18] sm:$0xff]   ;;  %v597_v27 = vld [vmem:[#allocation6 + $0x20] sm:$0xff]   ;;  %v598_v28 = vld [vmem:[#allocation6 + $0x28] sm:$0xff]  }
  0x51   :  { %503 = vmatprep.subr.bf16.mxu0 %v725_v0  ;;  %523 = vmatprep.subr.bf16.mxu1 %v725_v0  ;;  %v599_v29 = vld [vmem:[#allocation6 + $0x30] sm:$0xff]   ;;  %v600_v30 = vld [vmem:[#allocation6 + $0x38] sm:$0xff]   ;;  %p697_p8 = pnand %p696_p7, %p690_p4 }
  0x52   :  { %v462_v31 = vld [vmem:[%s881_s2] ss:$0 sm:$0xff] }
  0x54   :  { %504 = vmatpush3.bf16.msra.mxu0 %v578_v3  ;;  %524 = vmatpush3.bf16.msra.mxu1 %v587_v8 }
  0x55   :  { %505 = vmatprep.subr.bf16.mxu0 %v725_v0  ;;  %525 = vmatprep.subr.bf16.mxu1 %v725_v0 }
  0x58   :  { %506 = vmatpush3.bf16.msra.mxu0 %v579_v5  ;;  %526 = vmatpush3.bf16.msra.mxu1 %v588_v10 }
  0x59   :  { %507 = vmatprep.subr.bf16.mxu0 %v725_v0  ;;  %527 = vmatprep.subr.bf16.mxu1 %v725_v0 }
  0x5c   :  { %508 = vmatpush3.bf16.msra.mxu0 %v580_v7  ;;  %528 = vmatpush3.bf16.msra.mxu1 %v589_v12 }
  0x5d   :  { %509 = vmatprep.subr.bf16.mxu0 %v725_v0  ;;  %529 = vmatprep.subr.bf16.mxu1 %v725_v0 }
  0x60   :  { %510 = vmatpush3.bf16.msra.mxu0 %v581_v9  ;;  %530 = vmatpush3.bf16.msra.mxu1 %v590_v14 }
  0x61   :  { %511 = vmatprep.subr.bf16.mxu0 %v725_v0  ;;  %531 = vmatprep.subr.bf16.mxu1 %v725_v0 }
  0x64   :  { %512 = vmatpush3.bf16.msra.mxu0 %v582_v11  ;;  %532 = vmatpush3.bf16.msra.mxu1 %v591_v16 }
  0x65   :  { %513 = vmatprep.subr.bf16.mxu0 %v725_v0  ;;  %533 = vmatprep.subr.bf16.mxu1 %v725_v0 }
  0x68   :  { %514 = vmatpush3.bf16.msra.mxu0 %v583_v13  ;;  %534 = vmatpush3.bf16.msra.mxu1 %v592_v17 }
  0x69   :  { %539 = vmatprep.subr.bf16.mxu1 %v725_v0 }
  0x6b   :  { %516 = vmatmul.mubr.bf16.vlgmr.msra.gmra.mrb[0].mxu0 %v584_v15 }
 0x13e   :  { %v187_v18 = vpop.f32.mrb[0].mxu0 }
 0x13f   :  { %v517_v19 = vpop.f32.mrb[1].mxu0 }
 0x140   :  { %v190_v20 = vpop.f32.mrb[2].mxu0 }
 0x141   :  { %v214_v22 = vpack.c.bf16 %v190_v20, %v187_v18  ;;  %v518_v23 = vpop.f32.mrb[3].mxu0 }
 0x143   :  { %536 = vmatmul.mubr.bf16.vlgmr.msra.gmra.mrb[0].mxu1 %v214_v22 }
 0x144   :  { %540 = vmatpush3.bf16.msra.mxu1 %v593_v21  ;;  %555 = vmatprep.mubr.msk.bf16.mxu1 %vm726_vm0, %v725_v0 }
 0x145   :  { %541 = vmatprep.subr.bf16.mxu1 %v725_v0 }
 0x148   :  { %542 = vmatpush3.bf16.msra.mxu1 %v594_v24 }
 0x149   :  { %543 = vmatprep.subr.bf16.mxu1 %v725_v0 }
 0x14c   :  { %544 = vmatpush3.bf16.msra.mxu1 %v595_v25 }
 0x14d   :  { %545 = vmatprep.subr.bf16.mxu1 %v725_v0 }
 0x150   :  { %546 = vmatpush3.bf16.msra.mxu1 %v596_v26 }
 0x151   :  { %547 = vmatprep.subr.bf16.mxu1 %v725_v0 }
 0x154   :  { %548 = vmatpush3.bf16.msra.mxu1 %v597_v27 }
 0x155   :  { %549 = vmatprep.subr.bf16.mxu1 %v725_v0 }
 0x158   :  { %550 = vmatpush3.bf16.msra.mxu1 %v598_v28 }
 0x159   :  { %551 = vmatprep.subr.bf16.mxu1 %v725_v0 }
 0x15c   :  { %552 = vmatpush3.bf16.msra.mxu1 %v599_v29 }
 0x15d   :  { %553 = vmatprep.subr.bf16.mxu1 %v725_v0 }
 0x160   :  { %554 = vmatpush3.bf16.msra.mxu1 %v600_v30 }
 0x163   :  { %556 = vmatmul.mubr.bf16.vlgmr.msra.gmra.mrb[0].mxu1 %v584_v15 }
 0x236   :  { %v415_v32 = vpop.f32.mrb[0].mxu1 }
 0x237   :  { %v416_v33 = vadd.f32 %v462_v31, %v415_v32  ;;  %v557_v34 = vpop.f32.mrb[1].mxu1 }
 0x238   :  { %v418_v35 = vpop.f32.mrb[2].mxu1 }
 0x239   :  { %424 = vst [vmem:[#allocation11] sm:$0xff] %v416_v33  ;;  %v419_v36 = vadd.f32 %v462_v31, %v418_v35  ;;  %v558_v37 = vpop.f32.mrb[3].mxu1 }
 0x23b   :  { %425 = vst [vmem:[#allocation11 + $0x8] sm:$0xff] %v419_v36 }
 0x23c   :  { %700 = shalt.err (!%p697_p8)
}
 0x23d   :  { %s701_s19 = scalar_lea.hbm %s884_s5, 256 }
 0x23e   :  { %p702_p9 = scmp.ne.s32.totalorder %s884_s5, %s701_s19  ;;  %p705_p10 = scmp.lt.u32.totalorder %s701_s19, %s884_s5 }
 0x240   :  { %p707_p11 = pnand %p705_p10, %p702_p9 }
 0x242   :  { %710 = shalt.err (!%p707_p11)
}
 0x243   :  { %s728_s25 = smov 128   ;;  %s729_s26 = smov 8  }
 0x244   :  { %437 = dma.vmem_to_hbm [thread:$0]  %s432_s1, 256, %s884_s5, [#allocation5], %s728_s25, %s728_s25, %s729_s26  }
 0x245   :  { %717 = dma.done.wait [#allocation5], 256  }
 0x246   :  { %718 = vsyncadd [#allocation5], 4294967040 }
 0x247   :  { %441 = vsyncpa [#allocation4], 1 }
 0x248   :  { %442 = vsyncpa [#allocation7], 1 }
 0x249   :  { %443 = vsyncpa [#allocation10], 1 }
 0x24a   :  { %444 = vsyncpa [#allocation5], 1 }

</bundles_post_ra>
